<compile_context>
chip_gen: v5e
topology: v5e:2x2
jax: 0.10.0
libtpu: 0.0.40
codegen_flags: <defaults>
</compile_context>

<pallas_src>
import jax
import jax.numpy as jnp
from jax import lax
from jax.experimental import pallas as pl
from jax.experimental.pallas import tpu as pltpu


def _make_conv_leaky_kernel(kh_size: int, kw_size: int, stride: int, padding: int):
    """Kernel factory, specialized at trace time on window size / stride / pad."""

    def kernel(x_ref, w_ref, scal_ref, o_ref):
        # x_ref   : (N, C_in, H, W)        f32 VMEM - raw, unpadded NCHW input
        # w_ref   : (C_out*C_in*KH*KW,)    f32 SMEM - flattened conv weights
        # scal_ref: (C_out + 1,)           f32 SMEM - [bias..., negative_slope]
        # o_ref   : (N, C_out, Ho, Wo)     f32 VMEM - output (NCHW)
        n_batch, c_in, h_in, w_in = x_ref.shape
        _, c_out, h_out, w_out = o_ref.shape
        slope = scal_ref[c_out]

        # Constant 0/1 selection matrices built from 2-D iotas.  They fold both
        # the stride-2 decimation and the zero padding:
        #   A_kh[ho, i] = 1 iff i == stride*ho + kh - padding   (Ho, H)
        #   B_kw[j, wo] = 1 iff j == stride*wo + kw - padding   (W, Wo)
        # Out-of-range taps get an all-zero row/column -> implicit zero padding,
        # so the raw (unpadded) input is used directly.
        row_i = lax.broadcasted_iota(jnp.int32, (h_out, h_in), 1)
        row_o = lax.broadcasted_iota(jnp.int32, (h_out, h_in), 0)
        a_mats = [
            (row_i == stride * row_o + (kh - padding)).astype(jnp.float32)
            for kh in range(kh_size)
        ]
        col_i = lax.broadcasted_iota(jnp.int32, (w_in, w_out), 0)
        col_o = lax.broadcasted_iota(jnp.int32, (w_in, w_out), 1)
        b_mats = [
            (col_i == stride * col_o + (kw - padding)).astype(jnp.float32)
            for kw in range(kw_size)
        ]

        for co in range(c_out):
            # Fold the kw taps + weights into one (W, Wo) matrix per (ci, kh).
            m_mats = []
            for ci in range(c_in):
                per_kh = []
                for kh in range(kh_size):
                    m = None
                    for kw in range(kw_size):
                        widx = ((co * c_in + ci) * kh_size + kh) * kw_size + kw
                        term = w_ref[widx] * b_mats[kw]
                        m = term if m is None else m + term
                    per_kh.append(m)
                m_mats.append(per_kh)

            for n in range(n_batch):
                acc = None
                for ci in range(c_in):
                    x_img = x_ref[n, ci]                                  # (H, W)
                    for kh in range(kh_size):
                        t = jnp.dot(x_img, m_mats[ci][kh],
                                    preferred_element_type=jnp.float32)   # (H, Wo)
                        contrib = jnp.dot(a_mats[kh], t,
                                          preferred_element_type=jnp.float32)  # (Ho, Wo)
                        acc = contrib if acc is None else acc + contrib
                acc = acc + scal_ref[co]                                   # bias
                # leaky-ReLU: == where(v > 0, v, v*slope) for slope <= 1
                o_ref[n, co] = jnp.maximum(acc, acc * slope)

    return kernel


def conv2d_leaky_relu(x, weight, bias, negative_slope, *, stride=2, padding=1):
    """x: (N, C_in, H, W) f32.  weight: (C_out, C_in, KH, KW).  bias: (C_out,)."""
    n, c_in, h, w = x.shape
    c_out, _, kh, kw = weight.shape

    h_out = (h + 2 * padding - kh) // stride + 1
    w_out = (w + 2 * padding - kw) // stride + 1

    # Scalars for SMEM: flattened weights, then [bias..., negative_slope].
    w_flat = weight.astype(jnp.float32).reshape(-1)
    scal = jnp.concatenate(
        [bias.astype(jnp.float32).reshape(-1),
         jnp.asarray(negative_slope, jnp.float32).reshape(1)]
    )

    kernel = _make_conv_leaky_kernel(kh, kw, stride, padding)

    out = pl.pallas_call(
        kernel,
        out_shape=jax.ShapeDtypeStruct((n, c_out, h_out, w_out), jnp.float32),
        in_specs=[
            pl.BlockSpec(memory_space=pltpu.MemorySpace.VMEM),   # x (whole array)
            pl.BlockSpec(memory_space=pltpu.MemorySpace.SMEM),   # weights
            pl.BlockSpec(memory_space=pltpu.MemorySpace.SMEM),   # bias + slope
        ],
        out_specs=pl.BlockSpec(memory_space=pltpu.MemorySpace.VMEM),
    )(x.astype(jnp.float32), w_flat, scal)

    return out  # already NCHW: (N, C_out, Ho, Wo)


def _reference(x, weight, bias, negative_slope, *, stride=2, padding=1):
    y = lax.conv_general_dilated(
        x, weight,
        window_strides=(stride, stride),
        padding=[(padding, padding), (padding, padding)],
        dimension_numbers=("NCHW", "OIHW", "NCHW"),
    ) + bias.reshape(1, -1, 1, 1)
    return jnp.where(y > 0, y, y * negative_slope)


if __name__ == "__main__":
    key = jax.random.PRNGKey(0)
    k_x, k_w, k_b = jax.random.split(key, 3)

    N, C_IN, C_OUT, H, W, KS = 2, 1, 1, 16, 16, 3
    x = jax.random.normal(k_x, (N, C_IN, H, W), dtype=jnp.float32)

    # Conv2d-style init: U(-1/sqrt(fan_in), 1/sqrt(fan_in))
    fan_in = C_IN * KS * KS
    bound = 1.0 / (fan_in ** 0.5)
    weight = jax.random.uniform(k_w, (C_OUT, C_IN, KS, KS),
                                minval=-bound, maxval=bound, dtype=jnp.float32)
    bias = jax.random.uniform(k_b, (C_OUT,),
                              minval=-bound, maxval=bound, dtype=jnp.float32)

    negative_slope = 0.2

    out = conv2d_leaky_relu(x, weight, bias, negative_slope, stride=2, padding=1)
    out = jax.block_until_ready(out)

    ref = _reference(x, weight, bias, negative_slope, stride=2, padding=1)
    assert out.shape == (N, C_OUT, 8, 8), out.shape
    assert jnp.allclose(out, ref, atol=1e-5, rtol=1e-5), "mismatch vs reference"

    print("KERNEL_OK")
</pallas_src>

<mosaic_0001>
module attributes {stable_mosaic.version = 11 : i64} {
  func.func @kernel(%arg0: memref<2x1x16x16xf32, #tpu.memory_space<vmem>>, %arg1: memref<9xf32, #tpu.memory_space<smem>>, %arg2: memref<2xf32, #tpu.memory_space<smem>>, %arg3: memref<2x1x8x8xf32, #tpu.memory_space<vmem>>) attributes {dimension_semantics = [], scalar_prefetch = 0 : i64, scratch_operands = 0 : i64, tpu.core_type = #tpu.core_type<tc>} {
    %c1 = arith.constant 1 : index
    %0 = memref.load %arg2[%c1] : memref<2xf32, #tpu.memory_space<smem>>
    %1 = tpu.iota {dimensions = array<i32: 1>} : vector<8x16xi32>
    %2 = tpu.iota {dimensions = array<i32: 0>} : vector<8x16xi32>
    %c2_i32 = arith.constant 2 : i32
    %3 = vector.broadcast %c2_i32 : i32 to vector<8x16xi32>
    %4 = arith.muli %3, %2 : vector<8x16xi32>
    %c-1_i32 = arith.constant -1 : i32
    %5 = vector.broadcast %c-1_i32 : i32 to vector<8x16xi32>
    %6 = arith.addi %4, %5 : vector<8x16xi32>
    %7 = arith.cmpi eq, %1, %6 : vector<8x16xi32>
    %8 = arith.extui %7 : vector<8x16xi1> to vector<8x16xi32>
    %9 = arith.sitofp %8 : vector<8x16xi32> to vector<8x16xf32>
    %c2_i32_0 = arith.constant 2 : i32
    %10 = vector.broadcast %c2_i32_0 : i32 to vector<8x16xi32>
    %11 = arith.muli %10, %2 : vector<8x16xi32>
    %c0_i32 = arith.constant 0 : i32
    %12 = vector.broadcast %c0_i32 : i32 to vector<8x16xi32>
    %13 = arith.addi %11, %12 : vector<8x16xi32>
    %14 = arith.cmpi eq, %1, %13 : vector<8x16xi32>
    %15 = arith.extui %14 : vector<8x16xi1> to vector<8x16xi32>
    %16 = arith.sitofp %15 : vector<8x16xi32> to vector<8x16xf32>
    %c2_i32_1 = arith.constant 2 : i32
    %17 = vector.broadcast %c2_i32_1 : i32 to vector<8x16xi32>
    %18 = arith.muli %17, %2 : vector<8x16xi32>
    %c1_i32 = arith.constant 1 : i32
    %19 = vector.broadcast %c1_i32 : i32 to vector<8x16xi32>
    %20 = arith.addi %18, %19 : vector<8x16xi32>
    %21 = arith.cmpi eq, %1, %20 : vector<8x16xi32>
    %22 = arith.extui %21 : vector<8x16xi1> to vector<8x16xi32>
    %23 = arith.sitofp %22 : vector<8x16xi32> to vector<8x16xf32>
    %24 = tpu.iota {dimensions = array<i32: 0>} : vector<16x8xi32>
    %25 = tpu.iota {dimensions = array<i32: 1>} : vector<16x8xi32>
    %c2_i32_2 = arith.constant 2 : i32
    %26 = vector.broadcast %c2_i32_2 : i32 to vector<16x8xi32>
    %27 = arith.muli %26, %25 : vector<16x8xi32>
    %c-1_i32_3 = arith.constant -1 : i32
    %28 = vector.broadcast %c-1_i32_3 : i32 to vector<16x8xi32>
    %29 = arith.addi %27, %28 : vector<16x8xi32>
    %30 = arith.cmpi eq, %24, %29 : vector<16x8xi32>
    %31 = arith.extui %30 : vector<16x8xi1> to vector<16x8xi32>
    %32 = arith.sitofp %31 : vector<16x8xi32> to vector<16x8xf32>
    %c2_i32_4 = arith.constant 2 : i32
    %33 = vector.broadcast %c2_i32_4 : i32 to vector<16x8xi32>
    %34 = arith.muli %33, %25 : vector<16x8xi32>
    %c0_i32_5 = arith.constant 0 : i32
    %35 = vector.broadcast %c0_i32_5 : i32 to vector<16x8xi32>
    %36 = arith.addi %34, %35 : vector<16x8xi32>
    %37 = arith.cmpi eq, %24, %36 : vector<16x8xi32>
    %38 = arith.extui %37 : vector<16x8xi1> to vector<16x8xi32>
    %39 = arith.sitofp %38 : vector<16x8xi32> to vector<16x8xf32>
    %c2_i32_6 = arith.constant 2 : i32
    %40 = vector.broadcast %c2_i32_6 : i32 to vector<16x8xi32>
    %41 = arith.muli %40, %25 : vector<16x8xi32>
    %c1_i32_7 = arith.constant 1 : i32
    %42 = vector.broadcast %c1_i32_7 : i32 to vector<16x8xi32>
    %43 = arith.addi %41, %42 : vector<16x8xi32>
    %44 = arith.cmpi eq, %24, %43 : vector<16x8xi32>
    %45 = arith.extui %44 : vector<16x8xi1> to vector<16x8xi32>
    %46 = arith.sitofp %45 : vector<16x8xi32> to vector<16x8xf32>
    %c0 = arith.constant 0 : index
    %47 = memref.load %arg1[%c0] : memref<9xf32, #tpu.memory_space<smem>>
    %48 = vector.broadcast %47 : f32 to vector<16x8xf32>
    %49 = arith.mulf %48, %32 : vector<16x8xf32>
    %c1_8 = arith.constant 1 : index
    %50 = memref.load %arg1[%c1_8] : memref<9xf32, #tpu.memory_space<smem>>
    %51 = vector.broadcast %50 : f32 to vector<16x8xf32>
    %52 = arith.mulf %51, %39 : vector<16x8xf32>
    %53 = arith.addf %49, %52 : vector<16x8xf32>
    %c2 = arith.constant 2 : index
    %54 = memref.load %arg1[%c2] : memref<9xf32, #tpu.memory_space<smem>>
    %55 = vector.broadcast %54 : f32 to vector<16x8xf32>
    %56 = arith.mulf %55, %46 : vector<16x8xf32>
    %57 = arith.addf %53, %56 : vector<16x8xf32>
    %c3 = arith.constant 3 : index
    %58 = memref.load %arg1[%c3] : memref<9xf32, #tpu.memory_space<smem>>
    %59 = vector.broadcast %58 : f32 to vector<16x8xf32>
    %60 = arith.mulf %59, %32 : vector<16x8xf32>
    %c4 = arith.constant 4 : index
    %61 = memref.load %arg1[%c4] : memref<9xf32, #tpu.memory_space<smem>>
    %62 = vector.broadcast %61 : f32 to vector<16x8xf32>
    %63 = arith.mulf %62, %39 : vector<16x8xf32>
    %64 = arith.addf %60, %63 : vector<16x8xf32>
    %c5 = arith.constant 5 : index
    %65 = memref.load %arg1[%c5] : memref<9xf32, #tpu.memory_space<smem>>
    %66 = vector.broadcast %65 : f32 to vector<16x8xf32>
    %67 = arith.mulf %66, %46 : vector<16x8xf32>
    %68 = arith.addf %64, %67 : vector<16x8xf32>
    %c6 = arith.constant 6 : index
    %69 = memref.load %arg1[%c6] : memref<9xf32, #tpu.memory_space<smem>>
    %70 = vector.broadcast %69 : f32 to vector<16x8xf32>
    %71 = arith.mulf %70, %32 : vector<16x8xf32>
    %c7 = arith.constant 7 : index
    %72 = memref.load %arg1[%c7] : memref<9xf32, #tpu.memory_space<smem>>
    %73 = vector.broadcast %72 : f32 to vector<16x8xf32>
    %74 = arith.mulf %73, %39 : vector<16x8xf32>
    %75 = arith.addf %71, %74 : vector<16x8xf32>
    %c8 = arith.constant 8 : index
    %76 = memref.load %arg1[%c8] : memref<9xf32, #tpu.memory_space<smem>>
    %77 = vector.broadcast %76 : f32 to vector<16x8xf32>
    %78 = arith.mulf %77, %46 : vector<16x8xf32>
    %79 = arith.addf %75, %78 : vector<16x8xf32>
    %c0_9 = arith.constant 0 : index
    %c0_10 = arith.constant 0 : index
    %c0_11 = arith.constant 0 : index
    %c0_12 = arith.constant 0 : index
    %80 = vector.load %arg0[%c0_9, %c0_10, %c0_11, %c0_12] : memref<2x1x16x16xf32, #tpu.memory_space<vmem>>, vector<1x1x16x16xf32>
    %81 = vector.shape_cast %80 : vector<1x1x16x16xf32> to vector<16x16xf32>
    %cst = arith.constant dense<0.000000e+00> : vector<16x8xf32>
    %82 = tpu.matmul %81, %57, %cst {dimension_numbers = #tpu.dot_dimension_numbers<[1], [0], [0], [1], [0, 0, 1, 1], [], []>} : vector<16x16xf32>, vector<16x8xf32>, vector<16x8xf32> -> vector<16x8xf32>
    %cst_13 = arith.constant dense<0.000000e+00> : vector<8x8xf32>
    %83 = tpu.matmul %9, %82, %cst_13 {dimension_numbers = #tpu.dot_dimension_numbers<[1], [0], [0], [1], [0, 0, 1, 1], [], []>} : vector<8x16xf32>, vector<16x8xf32>, vector<8x8xf32> -> vector<8x8xf32>
    %cst_14 = arith.constant dense<0.000000e+00> : vector<16x8xf32>
    %84 = tpu.matmul %81, %68, %cst_14 {dimension_numbers = #tpu.dot_dimension_numbers<[1], [0], [0], [1], [0, 0, 1, 1], [], []>} : vector<16x16xf32>, vector<16x8xf32>, vector<16x8xf32> -> vector<16x8xf32>
    %cst_15 = arith.constant dense<0.000000e+00> : vector<8x8xf32>
    %85 = tpu.matmul %16, %84, %cst_15 {dimension_numbers = #tpu.dot_dimension_numbers<[1], [0], [0], [1], [0, 0, 1, 1], [], []>} : vector<8x16xf32>, vector<16x8xf32>, vector<8x8xf32> -> vector<8x8xf32>
    %86 = arith.addf %83, %85 : vector<8x8xf32>
    %cst_16 = arith.constant dense<0.000000e+00> : vector<16x8xf32>
    %87 = tpu.matmul %81, %79, %cst_16 {dimension_numbers = #tpu.dot_dimension_numbers<[1], [0], [0], [1], [0, 0, 1, 1], [], []>} : vector<16x16xf32>, vector<16x8xf32>, vector<16x8xf32> -> vector<16x8xf32>
    %cst_17 = arith.constant dense<0.000000e+00> : vector<8x8xf32>
    %88 = tpu.matmul %23, %87, %cst_17 {dimension_numbers = #tpu.dot_dimension_numbers<[1], [0], [0], [1], [0, 0, 1, 1], [], []>} : vector<8x16xf32>, vector<16x8xf32>, vector<8x8xf32> -> vector<8x8xf32>
    %89 = arith.addf %86, %88 : vector<8x8xf32>
    %c0_18 = arith.constant 0 : index
    %90 = memref.load %arg2[%c0_18] : memref<2xf32, #tpu.memory_space<smem>>
    %91 = vector.broadcast %90 : f32 to vector<8x8xf32>
    %92 = arith.addf %89, %91 : vector<8x8xf32>
    %93 = vector.broadcast %0 : f32 to vector<8x8xf32>
    %94 = arith.mulf %92, %93 : vector<8x8xf32>
    %95 = arith.maximumf %92, %94 : vector<8x8xf32>
    %c0_19 = arith.constant 0 : index
    %c0_20 = arith.constant 0 : index
    %c0_21 = arith.constant 0 : index
    %c0_22 = arith.constant 0 : index
    %96 = vector.load %arg3[%c0_19, %c0_20, %c0_21, %c0_22] : memref<2x1x8x8xf32, #tpu.memory_space<vmem>>, vector<1x1x8x8xf32>
    %97 = vector.shape_cast %96 : vector<1x1x8x8xf32> to vector<8x8xf32>
    %98 = vector.shape_cast %95 : vector<8x8xf32> to vector<1x1x8x8xf32>
    tpu.vector_store %arg3[%c0_19, %c0_20, %c0_21, %c0_22], %98 {strides = array<i32>} : memref<2x1x8x8xf32, #tpu.memory_space<vmem>>, vector<1x1x8x8xf32>,
    %c1_23 = arith.constant 1 : index
    %c0_24 = arith.constant 0 : index
    %c0_25 = arith.constant 0 : index
    %c0_26 = arith.constant 0 : index
    %99 = vector.load %arg0[%c1_23, %c0_24, %c0_25, %c0_26] : memref<2x1x16x16xf32, #tpu.memory_space<vmem>>, vector<1x1x16x16xf32>
    %100 = vector.shape_cast %99 : vector<1x1x16x16xf32> to vector<16x16xf32>
    %cst_27 = arith.constant dense<0.000000e+00> : vector<16x8xf32>
    %101 = tpu.matmul %100, %57, %cst_27 {dimension_numbers = #tpu.dot_dimension_numbers<[1], [0], [0], [1], [0, 0, 1, 1], [], []>} : vector<16x16xf32>, vector<16x8xf32>, vector<16x8xf32> -> vector<16x8xf32>
    %cst_28 = arith.constant dense<0.000000e+00> : vector<8x8xf32>
    %102 = tpu.matmul %9, %101, %cst_28 {dimension_numbers = #tpu.dot_dimension_numbers<[1], [0], [0], [1], [0, 0, 1, 1], [], []>} : vector<8x16xf32>, vector<16x8xf32>, vector<8x8xf32> -> vector<8x8xf32>
    %cst_29 = arith.constant dense<0.000000e+00> : vector<16x8xf32>
    %103 = tpu.matmul %100, %68, %cst_29 {dimension_numbers = #tpu.dot_dimension_numbers<[1], [0], [0], [1], [0, 0, 1, 1], [], []>} : vector<16x16xf32>, vector<16x8xf32>, vector<16x8xf32> -> vector<16x8xf32>
    %cst_30 = arith.constant dense<0.000000e+00> : vector<8x8xf32>
    %104 = tpu.matmul %16, %103, %cst_30 {dimension_numbers = #tpu.dot_dimension_numbers<[1], [0], [0], [1], [0, 0, 1, 1], [], []>} : vector<8x16xf32>, vector<16x8xf32>, vector<8x8xf32> -> vector<8x8xf32>
    %105 = arith.addf %102, %104 : vector<8x8xf32>
    %cst_31 = arith.constant dense<0.000000e+00> : vector<16x8xf32>
    %106 = tpu.matmul %100, %79, %cst_31 {dimension_numbers = #tpu.dot_dimension_numbers<[1], [0], [0], [1], [0, 0, 1, 1], [], []>} : vector<16x16xf32>, vector<16x8xf32>, vector<16x8xf32> -> vector<16x8xf32>
    %cst_32 = arith.constant dense<0.000000e+00> : vector<8x8xf32>
    %107 = tpu.matmul %23, %106, %cst_32 {dimension_numbers = #tpu.dot_dimension_numbers<[1], [0], [0], [1], [0, 0, 1, 1], [], []>} : vector<8x16xf32>, vector<16x8xf32>, vector<8x8xf32> -> vector<8x8xf32>
    %108 = arith.addf %105, %107 : vector<8x8xf32>
    %c0_33 = arith.constant 0 : index
    %109 = memref.load %arg2[%c0_33] : memref<2xf32, #tpu.memory_space<smem>>
    %110 = vector.broadcast %109 : f32 to vector<8x8xf32>
    %111 = arith.addf %108, %110 : vector<8x8xf32>
    %112 = vector.broadcast %0 : f32 to vector<8x8xf32>
    %113 = arith.mulf %111, %112 : vector<8x8xf32>
    %114 = arith.maximumf %111, %113 : vector<8x8xf32>
    %c1_34 = arith.constant 1 : index
    %c0_35 = arith.constant 0 : index
    %c0_36 = arith.constant 0 : index
    %c0_37 = arith.constant 0 : index
    %115 = vector.load %arg3[%c1_34, %c0_35, %c0_36, %c0_37] : memref<2x1x8x8xf32, #tpu.memory_space<vmem>>, vector<1x1x8x8xf32>
    %116 = vector.shape_cast %115 : vector<1x1x8x8xf32> to vector<8x8xf32>
    %117 = vector.shape_cast %114 : vector<8x8xf32> to vector<1x1x8x8xf32>
    tpu.vector_store %arg3[%c1_34, %c0_35, %c0_36, %c0_37], %117 {strides = array<i32>} : memref<2x1x8x8xf32, #tpu.memory_space<vmem>>, vector<1x1x8x8xf32>,
    return
  }
}

</mosaic_0001>

<bundles_post_ra>
// kernel: tpu_custom_call.1
= control target key start
LH: loop header
LB: loop body
LE: loop exit
PB: predicated region body
PF: predicated region fallthrough
CT: control target
= control target key end

     0   :  { %8 = vsyncpa [#allocation3], 0  ;;  %s706_s0 = inlined_call_operand.hbm [shape: f32[2,1,16,16], index: 0, kind: input, shape index: {}]   ;;  %s707_s1 = inlined_call_operand.hbm [shape: f32[9], index: 1, kind: input, shape index: {}]   ;;  %s708_s2 = inlined_call_operand.vmem [shape: f32[2], index: 2, kind: input, shape index: {}]   ;;  %s709_s3 = inlined_call_operand.hbm [shape: f32[2,1,8,8], index: 3, kind: output, shape index: {}]  }
   0x1   :  { %9 = vsyncpa [#allocation5], 0 }
   0x2   :  { %10 = vsyncpa [#allocation6], 0 }
   0x3   :  { %11 = vsyncpa [#allocation4], 0  ;;  %s16_s14 = sshll.u32 %s706_s0, 4  ;;  %s589_s15 = smov [#allocation2]   ;;  %s17_s14 = int_to_ptr.hbm [resolvable:$true] %s16_s14 }
   0x4   :  { %s18_s16 = sshll.u32 %s589_s15, 4  ;;  %s30_s19 = sshll.u32 %s707_s1, 4  ;;  %s19_s16 = int_to_ptr.vmem [resolvable:$true] %s18_s16  ;;  %s31_s19 = int_to_ptr.hbm [resolvable:$true] %s30_s19 }
   0x5   :  { %s590_s20 = smov 128   ;;  %s591_s21 = smov 8  }
   0x6   :  { %24 = dma.hbm_to_vmem [thread:$0]  %s17_s14, 512, %s19_s16, [#allocation3], %s590_s20, %s590_s20, %s591_s21  }
   0x7   :  { %s592_s22 = smov [#allocation7]   ;;  %s39_s0 = sshll.u32 %s708_s2, 4  ;;  %s40_s0 = int_to_ptr.vmem [resolvable:$true] %s39_s0 }
   0x8   :  { %33 = dma.hbm_to_smem %s31_s19, 16, %s592_s22, [#allocation5]  }
   0x9   :  { %s593_s25 = smov [#allocation8]  }
   0xa   :  { %42 = dma.vmem_to_smem %s40_s0, 16, %s593_s25, [#allocation6]  }
   0xb   :  { %581 = dma.done.wait [#allocation3], 512  }
   0xc   :  { %582 = vsyncadd [#allocation3], 4294966784 }
   0xd   :  { %583 = dma.done.wait [#allocation5], 16  }
   0xe   :  { %584 = vsyncadd [#allocation5], 4294967280 }
   0xf   :  { %585 = dma.done.wait [#allocation6], 16  }
  0x10   :  { %586 = vsyncadd [#allocation6], 4294967280 }
  0x11   :  { %55 = sfence }
  0x12   :  { %v57_v0 = vlaneseq  ;;  %s628_s1 = sld [smem:[#allocation7]]  ;;  %v594_v7 = vmov 0.0   ;;  %v143_v39 = vld [vmem:[#allocation2] sm:$0xff]  ;;  %vm145_vm6 = vcmask 130048   ;;  %v144_v41 = vld [vmem:[#allocation2 + $0x8] sm:$0xff]  ;;  %v300_v42 = vld [vmem:[#allocation2 + $0x10] sm:$0xff] }
  0x13   :  { %s630_s26 = sld [smem:[#allocation7 + $0x1]]  ;;  %v301_v52 = vld [vmem:[#allocation2 + $0x18] sm:$0xff]  ;;  %vm297_vm10 = vcmask 64512   ;;  %s595_s8 = smov [#allocation9]  }
  0x14   :  { %v632_v1 = vand.u32 127, %v57_v0  ;;  %v634_v2 = vshrl.u32 %v57_v0, 7  ;;  %s636_s2 = sld [smem:[#allocation7 + $0x2]]  ;;  %s449_s9 = sshll.u32 %s595_s8, 4  ;;  %s450_s9 = int_to_ptr.vmem [resolvable:$true] %s449_s9 }
  0x15   :  { %s638_s27 = sld [smem:[#allocation7 + $0x3]]  ;;  %s451_s12 = sshll.u32 %s709_s3, 4  ;;  %s452_s12 = int_to_ptr.hbm [resolvable:$true] %s451_s12 }
  0x16   :  { %v73_v3 = vadd.s32 8, %v634_v2  ;;  %v74_v4 = vmul.u32 2, %v632_v1  ;;  %s642_s28 = sld [smem:[#allocation7 + $0x4]]  ;;  %v61_v43 = vmul.u32 2, %v634_v2 }
  0x17   :  { %s644_s29 = sld [smem:[#allocation7 + $0x5]] }
  0x18   :  { %v75_v5 = vadd.s32 4294967295, %v74_v4  ;;  %vm83_vm0 = vcmp.eq.s32.totalorder %v73_v3, %v74_v4  ;;  %v88_v6 = vadd.s32 1, %v74_v4  ;;  %v96_v9 = vstv %s628_s1  ;;  %s481_s30 = sld [smem:[#allocation7 + $0x6]] }
  0x19   :  { %v647_v8 = vsel %vm83_vm0, 1.0, %v594_v7  ;;  %v100_v10 = vstv %s630_s26  ;;  %vm82_vm1 = vcmp.eq.s32.totalorder %v634_v2, %v74_v4  ;;  %s482_s4 = sld [smem:[#allocation7 + $0x7]]  ;;  %v62_v48 = vadd.s32 4294967295, %v61_v43 }
  0x1a   :  { %vm77_vm2 = vcmp.eq.s32.totalorder %v73_v3, %v75_v5  ;;  %vm90_vm3 = vcmp.eq.s32.totalorder %v73_v3, %v88_v6  ;;  %v102_v11 = vmul.f32 %v647_v8, %v100_v10  ;;  %v106_v12 = vstv %s636_s2  ;;  %s483_s5 = sld [smem:[#allocation7 + $0x8]] }
  0x1b   :  { %v471_v13 = vsel %vm77_vm2, 1.0, %v594_v7  ;;  %v656_v14 = vsel %vm90_vm3, 1.0, %v594_v7  ;;  %v112_v15 = vstv %s638_s27  ;;  %vm76_vm4 = vcmp.eq.s32.totalorder %v634_v2, %v75_v5  ;;  %s291_s6 = sld [smem:[#allocation8]] }
  0x1c   :  { %v98_v16 = vmul.f32 %v471_v13, %v96_v9  ;;  %v108_v17 = vmul.f32 %v656_v14, %v106_v12  ;;  %v114_v18 = vmul.f32 %v471_v13, %v112_v15  ;;  %v116_v19 = vstv %s642_s28  ;;  %s466_s7 = sld [smem:[#allocation8 + $0x1]] }
  0x1d   :  { %v118_v20 = vmul.f32 %v647_v8, %v116_v19  ;;  %v122_v21 = vstv %s644_s29  ;;  %v470_v22 = vsel %vm76_vm4, 1.0, %v594_v7  ;;  %v472_v23 = vsel %vm82_vm1, 1.0, %v594_v7 }
  0x1e   :  { %v104_v24 = vadd.f32 %v102_v11, %v98_v16  ;;  %v124_v25 = vmul.f32 %v656_v14, %v122_v21  ;;  %vm89_vm5 = vcmp.eq.s32.totalorder %v634_v2, %v88_v6  ;;  %v97_v26 = vmul.f32 %v470_v22, %v96_v9 }
  0x1f   :  { %v120_v27 = vadd.f32 %v118_v20, %v114_v18  ;;  %v474_v28 = vsel %vm89_vm5, 1.0, %v594_v7  ;;  %v101_v29 = vmul.f32 %v472_v23, %v100_v10  ;;  %v113_v30 = vmul.f32 %v470_v22, %v112_v15 }
  0x20   :  { %v110_v31 = vadd.f32 %v108_v17, %v104_v24  ;;  %v107_v32 = vmul.f32 %v474_v28, %v106_v12  ;;  %v117_v33 = vmul.f32 %v472_v23, %v116_v19  ;;  %v123_v34 = vmul.f32 %v474_v28, %v122_v21 }
  0x21   :  { %v126_v35 = vadd.f32 %v124_v25, %v120_v27  ;;  %v103_v36 = vadd.f32 %v101_v29, %v97_v26  ;;  %v128_v44 = vstv %s481_s30  ;;  %v132_v45 = vstv %s482_s4 }
  0x22   :  { %166 = vmatpush.msra.mxu0 %v110_v31  ;;  %v119_v37 = vadd.f32 %v117_v33, %v113_v30  ;;  %v130_v49 = vmul.f32 %v471_v13, %v128_v44  ;;  %v134_v50 = vmul.f32 %v647_v8, %v132_v45  ;;  %v138_v51 = vstv %s483_s5 }
  0x23   :  { %189 = vmatpush.msra.mxu1 %v126_v35  ;;  %v109_v38 = vadd.f32 %v107_v32, %v103_v36  ;;  %v129_v53 = vmul.f32 %v470_v22, %v128_v44  ;;  %v133_v54 = vmul.f32 %v472_v23, %v132_v45  ;;  %vm63_vm7 = vcmp.eq.s32.totalorder %v632_v1, %v62_v48 }
  0x24   :  { %v125_v40 = vadd.f32 %v123_v34, %v119_v37  ;;  %v136_v55 = vadd.f32 %v134_v50, %v130_v49  ;;  %v140_v56 = vmul.f32 %v656_v14, %v138_v51  ;;  %vm66_vm8 = vcmp.eq.s32.totalorder %v632_v1, %v61_v43 }
  0x25   :  { %167 = vmatpush.msra.mxu0 %v109_v38  ;;  %v135_v58 = vadd.f32 %v133_v54, %v129_v53  ;;  %v139_v59 = vmul.f32 %v474_v28, %v138_v51  ;;  %v467_v61 = vsel %vm63_vm7, 1.0, %v594_v7  ;;  %v468_v62 = vsel %vm66_vm8, 1.0, %v594_v7 }
  0x26   :  { %190 = vmatpush.msra.mxu1 %v125_v40  ;;  %484 = vmatmul.msk.f32.vlgmr.msra.gmra.mxu0 %vm145_vm6, %v143_v39  ;;  %v142_v63 = vadd.f32 %v140_v56, %v136_v55  ;;  %v69_v8 = vadd.s32 1, %v61_v43  ;;  %v294_v15 = vstv %s466_s7 }
  0x27   :  { %486 = vmatmul.msk.f32.vlgmr.msra.gmra.mxu1 %vm145_vm6, %v143_v39  ;;  %322 = vmatpush.msrb.mxu0 %v110_v31  ;;  %v141_v0 = vadd.f32 %v139_v59, %v135_v58 }
  0x28   :  { %345 = vmatpush.msrb.mxu1 %v126_v35  ;;  %vm70_vm9 = vcmp.eq.s32.totalorder %v632_v1, %v69_v8 }
  0x29   :  { %323 = vmatpush.msrb.mxu0 %v109_v38  ;;  %v469_v10 = vsel %vm70_vm9, 1.0, %v594_v7  ;;  %v292_v7 = vstv %s291_s6 }
  0x2a   :  { %346 = vmatpush.msrb.mxu1 %v125_v40 }
  0x2e   :  { %485 = vmatmul.msk.f32.gmra.mxu0 %vm145_vm6, %v144_v41 }
  0x2f   :  { %487 = vmatmul.msk.f32.gmra.mxu1 %vm145_vm6, %v144_v41 }
  0x36   :  { %493 = vmatmul.msk.f32.vlgmr.msrb.gmra.mxu0 %vm145_vm6, %v300_v42 }
  0x37   :  { %495 = vmatmul.msk.f32.vlgmr.msrb.gmra.mxu1 %vm145_vm6, %v300_v42 }
  0x3e   :  { %494 = vmatmul.msk.f32.gmra.mxu0 %vm145_vm6, %v301_v52 }
  0x3f   :  { %496 = vmatmul.msk.f32.gmra.mxu1 %vm145_vm6, %v301_v52 }
  0xa3   :  { %v169_v46 = vpop.f32.mrf.mxu0 }
  0xa4   :  { %v192_v47 = vpop.f32.mrf.mxu1 }
  0xab   :  { %v172_v57 = vpop.f32.mrf.mxu0 }
  0xac   :  { %v195_v60 = vpop.f32.mrf.mxu1  ;;  %238 = vmatpush.msra.mxu3 %v172_v57 }
  0xad   :  { %215 = vmatpush.msra.mxu2 %v195_v60 }
  0xae   :  { %239 = vmatpush.msra.mxu3 %v169_v46 }
  0xaf   :  { %216 = vmatpush.msra.mxu2 %v192_v47  ;;  %489 = vmatmul.msk.f32.vlgmr.msra.gmra.mxu3 %vm145_vm6, %v467_v61 }
  0xb0   :  { %488 = vmatmul.msk.f32.vlgmr.msra.gmra.mxu2 %vm145_vm6, %v468_v62 }
  0xb1   :  { %258 = vmatpush.msrb.mxu2 %v142_v63 }
  0xb3   :  { %259 = vmatpush.msrb.mxu2 %v141_v0  ;;  %v325_v2 = vpop.f32.mrf.mxu0 }
  0xb4   :  { %v348_v6 = vpop.f32.mrf.mxu1 }
  0xb8   :  { %490 = vmatmul.msk.f32.vlgmr.msrb.gmra.mxu2 %vm145_vm6, %v143_v39 }
  0xbb   :  { %v328_v3 = vpop.f32.mrf.mxu0 }
  0xbc   :  { %388 = vmatpush.msra.mxu2 %v328_v3  ;;  %v351_v11 = vpop.f32.mrf.mxu1 }
  0xbe   :  { %389 = vmatpush.msra.mxu2 %v325_v2 }
  0xc0   :  { %491 = vmatmul.msk.f32.gmra.mxu2 %vm145_vm6, %v144_v41 }
  0xc8   :  { %498 = vmatmul.msk.f32.vlgmr.msra.gmra.mxu2 %vm145_vm6, %v467_v61 }
 0x132   :  { %v241_v12 = vpop.f32.mrf.mxu3 }
 0x133   :  { %v218_v4 = vpop.f32.mrf.mxu2 }
 0x134   :  { %v242_v1 = vadd.f32 %v241_v12, %v218_v4 }
 0x13b   :  { %v261_v5 = vpop.f32.mrf.mxu2 }
 0x143   :  { %v264_v9 = vpop.f32.mrf.mxu2 }
 0x144   :  { %284 = vmatpush.msrb.mxu3 %v264_v9 }
 0x146   :  { %285 = vmatpush.msrb.mxu3 %v261_v5 }
 0x147   :  { %492 = vmatmul.msk.f32.vlgmr.msrb.gmra.mxu3 %vm145_vm6, %v469_v10 }
 0x148   :  { %368 = vmatpush.msra.mxu3 %v351_v11 }
 0x14a   :  { %369 = vmatpush.msra.mxu3 %v348_v6 }
 0x14b   :  { %v391_v22 = vpop.f32.mrf.mxu2 }
 0x14c   :  { %408 = vmatpush.msrb.mxu3 %v142_v63 }
 0x14e   :  { %409 = vmatpush.msrb.mxu3 %v141_v0 }
 0x14f   :  { %497 = vmatmul.msk.f32.vlgmr.msra.gmra.mxu3 %vm145_vm6, %v468_v62 }
 0x157   :  { %499 = vmatmul.msk.f32.vlgmr.msrb.gmra.mxu3 %vm145_vm6, %v300_v42 }
 0x15f   :  { %500 = vmatmul.msk.f32.gmra.mxu3 %vm145_vm6, %v301_v52 }
 0x1ca   :  { %v287_v13 = vpop.f32.mrf.mxu3 }
 0x1cb   :  { %v290_v14 = vadd.f32 %v287_v13, %v242_v1 }
 0x1cd   :  { %v293_v16 = vadd.f32 %v292_v7, %v290_v14 }
 0x1cf   :  { %v295_v17 = vmul.f32 %v294_v15, %v293_v16 }
 0x1d1   :  { %v296_v18 = vmax.f32 %v293_v16, %v295_v17 }
 0x1d2   :  { %v371_v19 = vpop.f32.mrf.mxu3 }
 0x1d3   :  { %298 = vst.msk [vmem:[#allocation9] sm:$0xff] %vm297_vm10, %v296_v18  ;;  %v392_v23 = vadd.f32 %v391_v22, %v371_v19 }
 0x1da   :  { %v411_v20 = vpop.f32.mrf.mxu3 }
 0x1e2   :  { %v414_v21 = vpop.f32.mrf.mxu3 }
 0x1e3   :  { %431 = vmatpush.msra.mxu0 %v414_v21 }
 0x1e5   :  { %432 = vmatpush.msra.mxu0 %v411_v20 }
 0x1e6   :  { %501 = vmatmul.msk.f32.vlgmr.msra.gmra.mxu0 %vm145_vm6, %v469_v10 }
 0x263   :  { %v434_v24 = vpop.f32.mrf.mxu0 }
 0x264   :  { %v437_v25 = vadd.f32 %v434_v24, %v392_v23 }
 0x266   :  { %v440_v26 = vadd.f32 %v437_v25, %v292_v7 }
 0x268   :  { %v441_v27 = vmul.f32 %v440_v26, %v294_v15 }
 0x26a   :  { %v442_v28 = vmax.f32 %v440_v26, %v441_v27 }
 0x26c   :  { %444 = vst.msk [vmem:[#allocation9 + $0x8] sm:$0xff] %vm297_vm10, %v442_v28 }
 0x26d   :  { %457 = dma.vmem_to_hbm [thread:$0]  %s450_s9, 256, %s452_s12, [#allocation4], %s590_s20, %s590_s20, %s591_s21  }
 0x26e   :  { %587 = dma.done.wait [#allocation4], 256  }
 0x26f   :  { %588 = vsyncadd [#allocation4], 4294967040 }
 0x270   :  { %462 = vsyncpa [#allocation3], 1 }
 0x271   :  { %463 = vsyncpa [#allocation4], 1 }
 0x272   :  { %464 = vsyncpa [#allocation5], 1 }
 0x273   :  { %465 = vsyncpa [#allocation6], 1 }

</bundles_post_ra>
